<compile_context>
chip_gen: v6e
topology: v6e:2x2x1
jax: 0.10.0
libtpu: 0.0.40
codegen_flags: <defaults>
</compile_context>

<pallas_src>
import functools

import jax
import jax.numpy as jnp
from jax import lax
from jax.experimental import pallas as pl
from jax.experimental.pallas import tpu as pltpu


def _round_up(x: int, m: int) -> int:
    return (x + m - 1) // m * m


def value_critic_kernel(x_ref, w1t_ref, b1_ref, w2t_ref, b2_ref, w3_ref,
                        b3_ref, o_ref):
    """One batch tile of the fused 3-layer MLP, computed feature-major.

    Shapes (TB = batch tile, S = state_dim, H = hidden_dim), all f32:
      x_ref   (TB, S)  per-tile activations (pipelined per grid step)
      w1t_ref (H, S)   resident (constant index_map)
      b1_ref  (H, 1)   resident
      w2t_ref (H, H)   resident
      b2_ref  (H, 1)   resident
      w3_ref  (H, 1)   resident
      b3_ref  (1, 1)   SMEM scalar
      o_ref   (1, TB)  lane-dense output row
    """
    x = x_ref[...]                                               # (TB, S) f32

    # Layer 1 on the MXU as an "NT" contraction (like q @ k.T):
    #   h1[h, b] = sum_s W1t[h, s] * x[b, s]
    h1 = lax.dot_general(w1t_ref[...], x, (((1,), (1,)), ((), ())),
                         preferred_element_type=jnp.float32)     # (H, TB)
    h1 = jnp.maximum(h1 + b1_ref[...], 0.0)

    # Layer 2 on the MXU: (H, H) @ (H, TB), f32 accumulation.
    h2 = jnp.dot(w2t_ref[...], h1,
                 preferred_element_type=jnp.float32)             # (H, TB)
    h2 = jnp.maximum(h2 + b2_ref[...], 0.0)

    # Layer 3 (output dim 1): VPU multiply + XLU sublane reduce instead of a
    # degenerate N=1 MXU matmul; result is already a lane-dense (1, TB) row.
    out = jnp.sum(h2 * w3_ref[...], axis=0, keepdims=True) + b3_ref[0, 0]
    o_ref[...] = out.astype(o_ref.dtype)


def prepare_value_critic_params(params):
    """One-time layout prep (do this at init / load time, NOT per forward call).

    Takes PyTorch-like params (w1 (S,H), b1 (1,H), w2 (H,H), b2 (1,H),
    w3 (H,1), b3 (1,1)) and returns the kernel layout:
      (w1t (H,S), b1 (H,1), w2t (H,H), b2 (H,1), w3 (H,1), b3 (1,1)), all f32.
    """
    w1, b1, w2, b2, w3, b3 = params
    H = w1.shape[1]
    return (
        jnp.asarray(w1.T, jnp.float32),              # (H, S)
        jnp.asarray(jnp.reshape(b1, (H, 1)), jnp.float32),
        jnp.asarray(w2.T, jnp.float32),              # (H, H)
        jnp.asarray(jnp.reshape(b2, (H, 1)), jnp.float32),
        jnp.asarray(jnp.reshape(w3, (H, 1)), jnp.float32),
        jnp.asarray(jnp.reshape(b3, (1, 1)), jnp.float32),
    )


@functools.partial(jax.jit, static_argnames=("batch_block",))
def value_critic_forward(state, kernel_params, *, batch_block=4096):
    """state: (B, state_dim) f32 -> value: (B,) f32 (squeezed).

    `kernel_params` must come from prepare_value_critic_params (pre-transposed,
    f32).  `batch_block` must be a multiple of 128; with 4096 the per-grid-step
    Pallas overhead is well amortized on all generations, and the x block
    (TB x 128-lane-padded x 4 B, double-buffered ~ 4 MiB) plus resident weights
    fit comfortably in the 48 MiB VMEM budget below.
    """
    assert batch_block % 128 == 0, "batch_block must be a multiple of 128"
    w1t, b1c, w2t, b2c, w3c, b3s = kernel_params
    B, S = state.shape
    H = w1t.shape[0]

    # Batch tile: multiple of 128 so the (1, TB) output store is unmasked and
    # the (TB, S) input block satisfies the (8, 128) sublane rule.
    TB = min(batch_block, _round_up(B, 128))
    B_pad = _round_up(B, TB)
    x = state if B_pad == B else jnp.pad(state, ((0, B_pad - B), (0, 0)))

    grid = (B_pad // TB,)
    resident = lambda i: (0, 0)  # weights/biases: same block every grid step

    out = pl.pallas_call(
        value_critic_kernel,
        out_shape=jax.ShapeDtypeStruct((1, B_pad), jnp.float32),
        grid=grid,
        in_specs=[
            pl.BlockSpec((TB, S), lambda i: (i, 0)),   # x: batch-tiled
            pl.BlockSpec((H, S), resident),            # W1^T
            pl.BlockSpec((H, 1), resident),            # b1
            pl.BlockSpec((H, H), resident),            # W2^T
            pl.BlockSpec((H, 1), resident),            # b2
            pl.BlockSpec((H, 1), resident),            # w3
            pl.BlockSpec(memory_space=pltpu.MemorySpace.SMEM),  # b3 scalar
        ],
        out_specs=pl.BlockSpec((1, TB), lambda i: (0, i)),  # lane-dense row
        compiler_params=pltpu.CompilerParams(
            dimension_semantics=("parallel",),
            vmem_limit_bytes=48 * 1024 * 1024,   # > v5e's 16 MiB scoped
                                                 # default, < v7x's 64 MiB phys
        ),
    )(x, w1t, b1c, w2t, b2c, w3c, b3s)

    # Squeeze(-1) + drop batch padding: (1, B_pad) -> (B,)
    return out.reshape(-1)[:B].astype(state.dtype)


def init_value_critic_params(key, state_dim, hidden_dim=256, n_hidden=2,
                             dtype=jnp.float32):
    """Deterministic init mimicking nn.Linear default (uniform +/- 1/sqrt(fan_in))."""
    assert n_hidden == 2, "kernel is specialized for the default n_hidden=2"
    dims = (state_dim, hidden_dim, hidden_dim, 1)
    params = []
    for i in range(len(dims) - 1):
        fan_in, fan_out = dims[i], dims[i + 1]
        key, kw, kb = jax.random.split(key, 3)
        bound = 1.0 / jnp.sqrt(jnp.asarray(fan_in, dtype))
        w = jax.random.uniform(kw, (fan_in, fan_out), dtype, -bound, bound)
        b = jax.random.uniform(kb, (1, fan_out), dtype, -bound, bound)
        params.extend([w, b])
    return tuple(params)


def value_critic_reference(state, params):
    """Pure-JAX f32 reference, exactly the PyTorch ValueCritic forward."""
    w1, b1, w2, b2, w3, b3 = params
    h1 = jnp.maximum(jnp.dot(state, w1) + b1, 0.0)
    h2 = jnp.maximum(jnp.dot(h1, w2) + b2, 0.0)
    return (jnp.dot(h2, w3) + b3)[:, 0]


if __name__ == "__main__":
    key = jax.random.PRNGKey(0)
    batch, state_dim, hidden_dim = 8, 16, 32

    key, kp, kx = jax.random.split(key, 3)
    params = init_value_critic_params(kp, state_dim, hidden_dim, n_hidden=2)
    state = jax.random.normal(kx, (batch, state_dim), jnp.float32)

    kernel_params = prepare_value_critic_params(params)  # one-time layout prep

    out = value_critic_forward(state, kernel_params)
    out = jax.block_until_ready(out)

    ref = value_critic_reference(state, params)

    assert out.shape == (batch,), out.shape
    max_err = float(jnp.max(jnp.abs(out - ref)))
    print("max |kernel - f32 ref| =", max_err)
    assert jnp.allclose(out, ref, atol=1e-3, rtol=1e-3), (out, ref)

    print("KERNEL_OK")
</pallas_src>

<mosaic_0001>
module attributes {stable_mosaic.version = 11 : i64} {
  func.func @value_critic_kernel(%arg0: i32, %arg1: memref<128x16xf32, #tpu.memory_space<vmem>>, %arg2: memref<32x16xf32, #tpu.memory_space<vmem>>, %arg3: memref<32x1xf32, #tpu.memory_space<vmem>>, %arg4: memref<32x32xf32, #tpu.memory_space<vmem>>, %arg5: memref<32x1xf32, #tpu.memory_space<vmem>>, %arg6: memref<32x1xf32, #tpu.memory_space<vmem>>, %arg7: memref<1x1xf32, #tpu.memory_space<smem>>, %arg8: memref<1x128xf32, #tpu.memory_space<vmem>>) attributes {dimension_semantics = [#tpu.dimension_semantics<parallel>], iteration_bounds = array<i64: 1>, scalar_prefetch = 0 : i64, scratch_operands = 0 : i64, tpu.core_type = #tpu.core_type<tc>, window_params = [{transform_indices = @transform_0, window_bounds = array<i64: 128, 16>}, {pipeline_mode = #tpu.pipeline_mode<synchronous>, transform_indices = @transform_1, window_bounds = array<i64: 32, 16>}, {pipeline_mode = #tpu.pipeline_mode<synchronous>, transform_indices = @transform_2, window_bounds = array<i64: 32, 1>}, {pipeline_mode = #tpu.pipeline_mode<synchronous>, transform_indices = @transform_3, window_bounds = array<i64: 32, 32>}, {pipeline_mode = #tpu.pipeline_mode<synchronous>, transform_indices = @transform_4, window_bounds = array<i64: 32, 1>}, {pipeline_mode = #tpu.pipeline_mode<synchronous>, transform_indices = @transform_5, window_bounds = array<i64: 32, 1>}, {transform_indices = @transform_6, window_bounds = array<i64: 1, 1>}, {transform_indices = @transform_7, window_bounds = array<i64: 1, 128>}]} {
    %c0 = arith.constant 0 : index
    %c0_0 = arith.constant 0 : index
    %0 = vector.load %arg1[%c0, %c0_0] : memref<128x16xf32, #tpu.memory_space<vmem>>, vector<128x16xf32>
    %c0_1 = arith.constant 0 : index
    %c0_2 = arith.constant 0 : index
    %1 = vector.load %arg2[%c0_1, %c0_2] : memref<32x16xf32, #tpu.memory_space<vmem>>, vector<32x16xf32>
    %cst = arith.constant dense<0.000000e+00> : vector<32x128xf32>
    %2 = tpu.matmul %1, %0, %cst {dimension_numbers = #tpu.dot_dimension_numbers<[1], [1], [0], [0], [0, 0, 1, 0], [], []>} : vector<32x16xf32>, vector<128x16xf32>, vector<32x128xf32> -> vector<32x128xf32>
    %c0_3 = arith.constant 0 : index
    %c0_4 = arith.constant 0 : index
    %3 = vector.load %arg3[%c0_3, %c0_4] : memref<32x1xf32, #tpu.memory_space<vmem>>, vector<32x1xf32>
    %4 = vector.broadcast %3 : vector<32x1xf32> to vector<32x128xf32>
    %5 = arith.addf %2, %4 : vector<32x128xf32>
    %cst_5 = arith.constant 0.000000e+00 : f32
    %6 = vector.broadcast %cst_5 : f32 to vector<32x128xf32>
    %7 = arith.maximumf %5, %6 : vector<32x128xf32>
    %c0_6 = arith.constant 0 : index
    %c0_7 = arith.constant 0 : index
    %8 = vector.load %arg4[%c0_6, %c0_7] : memref<32x32xf32, #tpu.memory_space<vmem>>, vector<32x32xf32>
    %cst_8 = arith.constant dense<0.000000e+00> : vector<32x128xf32>
    %9 = tpu.matmul %8, %7, %cst_8 {dimension_numbers = #tpu.dot_dimension_numbers<[1], [0], [0], [1], [0, 0, 1, 1], [], []>} : vector<32x32xf32>, vector<32x128xf32>, vector<32x128xf32> -> vector<32x128xf32>
    %c0_9 = arith.constant 0 : index
    %c0_10 = arith.constant 0 : index
    %10 = vector.load %arg5[%c0_9, %c0_10] : memref<32x1xf32, #tpu.memory_space<vmem>>, vector<32x1xf32>
    %11 = vector.broadcast %10 : vector<32x1xf32> to vector<32x128xf32>
    %12 = arith.addf %9, %11 : vector<32x128xf32>
    %cst_11 = arith.constant 0.000000e+00 : f32
    %13 = vector.broadcast %cst_11 : f32 to vector<32x128xf32>
    %14 = arith.maximumf %12, %13 : vector<32x128xf32>
    %c0_12 = arith.constant 0 : index
    %c0_13 = arith.constant 0 : index
    %15 = vector.load %arg6[%c0_12, %c0_13] : memref<32x1xf32, #tpu.memory_space<vmem>>, vector<32x1xf32>
    %16 = vector.broadcast %15 : vector<32x1xf32> to vector<32x128xf32>
    %17 = arith.mulf %14, %16 : vector<32x128xf32>
    %cst_14 = arith.constant dense<0.000000e+00> : vector<128xf32>
    %18 = vector.multi_reduction <add>, %17, %cst_14 [0] : vector<32x128xf32> to vector<128xf32>
    %19 = vector.shape_cast %18 : vector<128xf32> to vector<1x128xf32>
    %c0_15 = arith.constant 0 : index
    %c0_16 = arith.constant 0 : index
    %20 = memref.load %arg7[%c0_15, %c0_16] : memref<1x1xf32, #tpu.memory_space<smem>>
    %21 = vector.broadcast %20 : f32 to vector<1x128xf32>
    %22 = arith.addf %19, %21 : vector<1x128xf32>
    %c0_17 = arith.constant 0 : index
    %c0_18 = arith.constant 0 : index
    %23 = vector.load %arg8[%c0_17, %c0_18] : memref<1x128xf32, #tpu.memory_space<vmem>>, vector<1x128xf32>
    tpu.vector_store %arg8[%c0_17, %c0_18], %22 {strides = array<i32>} : memref<1x128xf32, #tpu.memory_space<vmem>>, vector<1x128xf32>,
    return
  }
  func.func @transform_0(%arg0: i32) -> (i32, i32) {
    %c0_i32 = arith.constant 0 : i32
    %c0_i32_0 = arith.constant 0 : i32
    return %arg0, %c0_i32 : i32, i32
  }
  func.func @transform_1(%arg0: i32) -> (i32, i32) {
    %c0_i32 = arith.constant 0 : i32
    %c0_i32_0 = arith.constant 0 : i32
    %c0_i32_1 = arith.constant 0 : i32
    return %c0_i32, %c0_i32_0 : i32, i32
  }
  func.func @transform_2(%arg0: i32) -> (i32, i32) {
    %c0_i32 = arith.constant 0 : i32
    %c0_i32_0 = arith.constant 0 : i32
    %c0_i32_1 = arith.constant 0 : i32
    return %c0_i32, %c0_i32_0 : i32, i32
  }
  func.func @transform_3(%arg0: i32) -> (i32, i32) {
    %c0_i32 = arith.constant 0 : i32
    %c0_i32_0 = arith.constant 0 : i32
    %c0_i32_1 = arith.constant 0 : i32
    return %c0_i32, %c0_i32_0 : i32, i32
  }
  func.func @transform_4(%arg0: i32) -> (i32, i32) {
    %c0_i32 = arith.constant 0 : i32
    %c0_i32_0 = arith.constant 0 : i32
    %c0_i32_1 = arith.constant 0 : i32
    return %c0_i32, %c0_i32_0 : i32, i32
  }
  func.func @transform_5(%arg0: i32) -> (i32, i32) {
    %c0_i32 = arith.constant 0 : i32
    %c0_i32_0 = arith.constant 0 : i32
    %c0_i32_1 = arith.constant 0 : i32
    return %c0_i32, %c0_i32_0 : i32, i32
  }
  func.func @transform_6(%arg0: i32) -> (i32, i32) {
    %c0_i32 = arith.constant 0 : i32
    %c0_i32_0 = arith.constant 0 : i32
    %c0_i32_1 = arith.constant 0 : i32
    return %c0_i32, %c0_i32_0 : i32, i32
  }
  func.func @transform_7(%arg0: i32) -> (i32, i32) {
    %c0_i32 = arith.constant 0 : i32
    %c0_i32_0 = arith.constant 0 : i32
    return %c0_i32, %arg0 : i32, i32
  }
}

</mosaic_0001>

<bundles_post_ra>
// kernel: value_critic_forward.1
= control target key start
LH: loop header
LB: loop body
LE: loop exit
PB: predicated region body
PF: predicated region fallthrough
CT: control target
= control target key end

     0   :  { %vm71_vm0 = vcmask 130048   ;;  %v503_v2 = vmov 0   ;;  %vm249_vm1 = vcmask 261120   ;;  %s698_s0 = inlined_call_operand.vmem [shape: f32[128,16], index: 0, kind: input, shape index: {}]   ;;  %s699_s1 = inlined_call_operand.vmem [shape: f32[32,16], index: 1, kind: input, shape index: {}]   ;;  %s700_s2 = inlined_call_operand.vmem [shape: f32[32,1], index: 2, kind: input, shape index: {}]   ;;  %s701_s4 = inlined_call_operand.vmem [shape: f32[32,1], index: 4, kind: input, shape index: {}]   ;;  %s702_s5 = inlined_call_operand.vmem [shape: f32[32,1], index: 5, kind: input, shape index: {}]   ;;  %s703_s3 = inlined_call_operand.vmem [shape: f32[32,32], index: 3, kind: input, shape index: {}]   ;;  %s704_s6 = inlined_call_operand.<no memory space> [shape: f32[1,1], index: 6, kind: input, shape index: {}]   ;;  %s705_s7 = inlined_call_operand.vmem [shape: f32[1,128], index: 7, kind: output, shape index: {}]  }
   0x1   :  { %v42_v0 = vld [vmem:[%s698_s0 + $0x78] sm:$0xff]  ;;  %v41_v1 = vld [vmem:[%s698_s0 + $0x70] sm:$0xff]  ;;  %501 = vset.pattern.permute.xlu0 %v503_v2  ;;  %502 = vset.pattern.permute.xlu1 %v503_v2  ;;  %v40_v3 = vld [vmem:[%s698_s0 + $0x68] sm:$0xff] }
   0x2   :  { %448 = vmatprep.subr.msk.mxu0 %vm71_vm0, %v42_v0  ;;  %v43_v4 = vld [vmem:[%s699_s1] sm:$0xff]  ;;  %v50_v5 = vld [vmem:[%s700_s2 + $0x18] sm:$0xff]  ;;  %v48_v6 = vld [vmem:[%s700_s2 + $0x8] sm:$0xff] }
   0x3   :  { %449 = vmatpush3.xpose.msk.msra.mxu0 %vm71_vm0, %v42_v0  ;;  %480 = vmatprep.mubr.msk.f32.mxu0 %vm71_vm0, %v43_v4  ;;  %v39_v7 = vld [vmem:[%s698_s0 + $0x60] sm:$0xff]  ;;  %v49_v8 = vld [vmem:[%s700_s2 + $0x10] sm:$0xff]  ;;  %v38_v10 = vld [vmem:[%s698_s0 + $0x58] sm:$0xff] }
   0x4   :  { %450 = vmatprep.subr.msk.mxu0 %vm71_vm0, %v41_v1  ;;  %68 = vperm.xlu0 %501, %v50_v5   ;;  %v47_v9 = vld [vmem:[%s700_s2] sm:$0xff]  ;;  %v226_v12 = vld [vmem:[%s701_s4 + $0x8] sm:$0xff]  ;;  %v37_v13 = vld [vmem:[%s698_s0 + $0x50] sm:$0xff] }
   0x5   :  { %58 = vperm.xlu1 %502, %v48_v6   ;;  %v225_v11 = vld [vmem:[%s701_s4] sm:$0xff]  ;;  %v227_v14 = vld [vmem:[%s701_s4 + $0x10] sm:$0xff]  ;;  %v228_v15 = vld [vmem:[%s701_s4 + $0x18] sm:$0xff] }
   0x6   :  { %v36_v16 = vld [vmem:[%s698_s0 + $0x48] sm:$0xff]  ;;  %v351_v17 = vld [vmem:[%s702_s5] sm:$0xff]  ;;  %v353_v20 = vld [vmem:[%s702_s5 + $0x10] sm:$0xff] }
   0x7   :  { %451 = vmatpush3.xpose.msk.msra.mxu0 %vm71_vm0, %v41_v1  ;;  %v352_v18 = vld [vmem:[%s702_s5 + $0x8] sm:$0xff]  ;;  %v35_v19 = vld [vmem:[%s698_s0 + $0x40] sm:$0xff]  ;;  %v354_v21 = vld [vmem:[%s702_s5 + $0x18] sm:$0xff] }
   0x8   :  { %452 = vmatprep.subr.msk.mxu0 %vm71_vm0, %v40_v3  ;;  %63 = vperm.xlu0 %501, %v49_v8   ;;  %v34_v22 = vld [vmem:[%s698_s0 + $0x38] sm:$0xff]  ;;  %v33_v23 = vld [vmem:[%s698_s0 + $0x30] sm:$0xff]  ;;  %v32_v24 = vld [vmem:[%s698_s0 + $0x28] sm:$0xff] }
   0x9   :  { %53 = vperm.xlu1 %502, %v47_v9   ;;  %v31_v25 = vld [vmem:[%s698_s0 + $0x20] sm:$0xff]  ;;  %v30_v26 = vld [vmem:[%s698_s0 + $0x18] sm:$0xff]  ;;  %v29_v27 = vld [vmem:[%s698_s0 + $0x10] sm:$0xff] }
   0xa   :  { %v28_v28 = vld [vmem:[%s698_s0 + $0x8] sm:$0xff]  ;;  %v27_v29 = vld [vmem:[%s698_s0] sm:$0xff]  ;;  %v45_v31 = vld [vmem:[%s699_s1 + $0x10] sm:$0xff] }
   0xb   :  { %453 = vmatpush3.xpose.msk.msra.mxu0 %vm71_vm0, %v40_v3  ;;  %v44_v30 = vld [vmem:[%s699_s1 + $0x8] sm:$0xff]  ;;  %v46_v32 = vld [vmem:[%s699_s1 + $0x18] sm:$0xff]  ;;  %v221_v33 = vld [vmem:[%s703_s3] sm:$0xff] }
   0xc   :  { %454 = vmatprep.subr.msk.mxu0 %vm71_vm0, %v39_v7  ;;  %231 = vperm.xlu0 %501, %v225_v11   ;;  %v222_v50 = vld [vmem:[%s703_s3 + $0x8] sm:$0xff]  ;;  %v223_v51 = vld [vmem:[%s703_s3 + $0x10] sm:$0xff]  ;;  %v224_v52 = vld [vmem:[%s703_s3 + $0x18] sm:$0xff] }
   0xd   :  { %236 = vperm.xlu1 %502, %v226_v12   ;;  %494 = vmatprep.mubr.msk.f32.mxu1 %vm249_vm1, %v221_v33 }
   0xf   :  { %455 = vmatpush3.xpose.msk.msra.mxu0 %vm71_vm0, %v39_v7 }
  0x10   :  { %456 = vmatprep.subr.msk.mxu0 %vm71_vm0, %v38_v10  ;;  %241 = vperm.xlu0 %501, %v227_v14  }
  0x11   :  { %246 = vperm.xlu1 %502, %v228_v15  }
  0x13   :  { %457 = vmatpush3.xpose.msk.msra.mxu0 %vm71_vm0, %v38_v10 }
  0x14   :  { %458 = vmatprep.subr.msk.mxu0 %vm71_vm0, %v37_v13  ;;  %357 = vperm.xlu0 %501, %v351_v17  }
  0x15   :  { %362 = vperm.xlu1 %502, %v352_v18  }
  0x17   :  { %459 = vmatpush3.xpose.msk.msra.mxu0 %vm71_vm0, %v37_v13 }
  0x18   :  { %460 = vmatprep.subr.msk.mxu0 %vm71_vm0, %v36_v16  ;;  %367 = vperm.xlu0 %501, %v353_v20  }
  0x19   :  { %372 = vperm.xlu1 %502, %v354_v21   ;;  %v389_v21 = vstv %s704_s6 }
  0x1b   :  { %461 = vmatpush3.xpose.msk.msra.mxu0 %vm71_vm0, %v36_v16 }
  0x1c   :  { %462 = vmatprep.subr.msk.mxu0 %vm71_vm0, %v35_v19 }
  0x1f   :  { %463 = vmatpush3.xpose.msk.msra.mxu0 %vm71_vm0, %v35_v19 }
  0x20   :  { %464 = vmatprep.subr.msk.mxu0 %vm71_vm0, %v34_v22 }
  0x23   :  { %465 = vmatpush3.xpose.msk.msra.mxu0 %vm71_vm0, %v34_v22 }
  0x24   :  { %466 = vmatprep.subr.msk.mxu0 %vm71_vm0, %v33_v23 }
  0x27   :  { %467 = vmatpush3.xpose.msk.msra.mxu0 %vm71_vm0, %v33_v23 }
  0x28   :  { %468 = vmatprep.subr.msk.mxu0 %vm71_vm0, %v32_v24 }
  0x2b   :  { %469 = vmatpush3.xpose.msk.msra.mxu0 %vm71_vm0, %v32_v24 }
  0x2c   :  { %470 = vmatprep.subr.msk.mxu0 %vm71_vm0, %v31_v25 }
  0x2f   :  { %471 = vmatpush3.xpose.msk.msra.mxu0 %vm71_vm0, %v31_v25 }
  0x30   :  { %472 = vmatprep.subr.msk.mxu0 %vm71_vm0, %v30_v26 }
  0x33   :  { %473 = vmatpush3.xpose.msk.msra.mxu0 %vm71_vm0, %v30_v26 }
  0x34   :  { %474 = vmatprep.subr.msk.mxu0 %vm71_vm0, %v29_v27 }
  0x37   :  { %475 = vmatpush3.xpose.msk.msra.mxu0 %vm71_vm0, %v29_v27 }
  0x38   :  { %476 = vmatprep.subr.msk.mxu0 %vm71_vm0, %v28_v28 }
  0x3b   :  { %477 = vmatpush3.xpose.msk.msra.mxu0 %vm71_vm0, %v28_v28 }
  0x3c   :  { %478 = vmatprep.subr.msk.mxu0 %vm71_vm0, %v27_v29 }
  0x3f   :  { %479 = vmatpush3.xpose.msk.msra.mxu0 %vm71_vm0, %v27_v29 }
  0x42   :  { %481 = vmatmul.mubr.msk.f32.vlgmr.msra.gmra.mxu0 %vm71_vm0, %v44_v30 }
  0x43   :  { %483 = vmatprep.mubr.msk.f32.mxu0 %vm71_vm0, %v45_v31 }
  0x46   :  { %484 = vmatmul.mubr.msk.f32.gmra.mxu0 %vm71_vm0, %v46_v32 }
  0x7f   :  { %v69_v34 = vpop.permute.xlu0 %68 }
  0x80   :  { %v59_v36 = vpop.permute.xlu1 %58 }
  0x83   :  { %v64_v40 = vpop.permute.xlu0 %63 }
  0x84   :  { %v54_v45 = vpop.permute.xlu1 %53 }
  0x87   :  { %v232_v53 = vpop.permute.xlu0 %231 }
  0x88   :  { %v237_v54 = vpop.permute.xlu1 %236 }
  0x8b   :  { %v242_v55 = vpop.permute.xlu0 %241 }
  0x8c   :  { %v247_v56 = vpop.permute.xlu1 %246 }
  0x8f   :  { %v358_v61 = vpop.permute.xlu0 %357 }
  0x90   :  { %v363_v2 = vpop.permute.xlu1 %362 }
  0x93   :  { %v368_v9 = vpop.permute.xlu0 %367 }
  0x94   :  { %v373_v12 = vpop.permute.xlu1 %372 }
 0x102   :  { %v482_v35 = vpop.f32.mrf.mxu0 }
 0x103   :  { %v204_v42 = vadd.f32 %v482_v35, %v59_v36 }
 0x104   :  { %v198_v37 = vpop.f32.mrf.mxu0 }
 0x105   :  { %v199_v46 = vadd.f32 %v198_v37, %v54_v45  ;;  %v218_v48 = vmax.f32 %v204_v42, 0.0 }
 0x106   :  { %v485_v38 = vpop.f32.mrf.mxu0 }
 0x107   :  { %v214_v39 = vadd.f32 %v485_v38, %v69_v34  ;;  %v217_v49 = vmax.f32 %v199_v46, 0.0 }
 0x108   :  { %v208_v41 = vpop.f32.mrf.mxu0 }
 0x109   :  { %v220_v43 = vmax.f32 %v214_v39, 0.0  ;;  %v209_v44 = vadd.f32 %v208_v41, %v64_v40 }
 0x10b   :  { %v219_v47 = vmax.f32 %v209_v44, 0.0  ;;  %486 = vmatprep.subr.mxu1 %v220_v43 }
 0x10c   :  { %487 = vmatpush3.msra.mxu1 %v220_v43 }
 0x10d   :  { %488 = vmatprep.subr.mxu1 %v219_v47 }
 0x10e   :  { %489 = vmatpush3.msra.mxu1 %v219_v47 }
 0x10f   :  { %490 = vmatprep.subr.mxu1 %v218_v48 }
 0x110   :  { %491 = vmatpush3.msra.mxu1 %v218_v48 }
 0x111   :  { %492 = vmatprep.subr.mxu1 %v217_v49 }
 0x112   :  { %493 = vmatpush3.msra.mxu1 %v217_v49 }
 0x113   :  { %495 = vmatmul.mubr.msk.f32.vlgmr.msra.gmra.mxu1 %vm249_vm1, %v222_v50 }
 0x114   :  { %497 = vmatprep.mubr.msk.f32.mxu1 %vm249_vm1, %v223_v51 }
 0x117   :  { %498 = vmatmul.mubr.msk.f32.gmra.mxu1 %vm249_vm1, %v224_v52 }
 0x1d3   :  { %v496_v57 = vpop.f32.mrf.mxu1 }
 0x1d4   :  { %v334_v58 = vadd.f32 %v496_v57, %v237_v54 }
 0x1d5   :  { %v328_v59 = vpop.f32.mrf.mxu1 }
 0x1d6   :  { %v329_v60 = vadd.f32 %v328_v59, %v232_v53  ;;  %v348_v63 = vmax.f32 %v334_v58, 0.0 }
 0x1d7   :  { %v499_v62 = vpop.f32.mrf.mxu1 }
 0x1d8   :  { %v347_v0 = vmax.f32 %v329_v60, 0.0  ;;  %v344_v1 = vadd.f32 %v499_v62, %v247_v56  ;;  %v376_v6 = vmul.f32 %v363_v2, %v348_v63 }
 0x1d9   :  { %v338_v3 = vpop.f32.mrf.mxu1 }
 0x1da   :  { %v375_v4 = vmul.f32 %v358_v61, %v347_v0  ;;  %v339_v5 = vadd.f32 %v338_v3, %v242_v55  ;;  %v350_v7 = vmax.f32 %v344_v1, 0.0 }
 0x1dc   :  { %v349_v8 = vmax.f32 %v339_v5, 0.0  ;;  %v379_v10 = vadd.f32 %v376_v6, %v375_v4  ;;  %v378_v13 = vmul.f32 %v373_v12, %v350_v7 }
 0x1de   :  { %v377_v11 = vmul.f32 %v368_v9, %v349_v8 }
 0x1e0   :  { %v380_v14 = vadd.f32 %v379_v10, %v377_v11 }
 0x1e2   :  { %v381_v15 = vadd.f32 %v380_v14, %v378_v13 }
 0x1e4   :  { %v382_v16 = vrot.slane %v381_v15, 4 }
 0x1e6   :  { %v383_v17 = vadd.f32 %v382_v16, %v381_v15 }
 0x1e8   :  { %v384_v18 = vrot.slane %v383_v17, 2 }
 0x1ea   :  { %v385_v19 = vadd.f32 %v384_v18, %v383_v17 }
 0x1ec   :  { %v386_v20 = vrot.slane %v385_v19, 1 }
 0x1ee   :  { %v387_v22 = vadd.f32 %v386_v20, %v385_v19 }
 0x1f0   :  { %v390_v23 = vadd.f32 %v389_v21, %v387_v22 }
 0x1f2   :  { %391 = vst [vmem:[%s705_s7] sm:$0x1] %v390_v23 }

</bundles_post_ra>
